<compile_context>
chip_gen: v7x
topology: tpu7x:2x2x1
jax: 0.10.0
libtpu: 0.0.40
codegen_flags: <defaults>
</compile_context>

<pallas_src>
import functools

import jax
import jax.numpy as jnp
from jax.experimental import pallas as pl
from jax.experimental.pallas import tpu as pltpu


def _round_up(x, m):
    return ((x + m - 1) // m) * m


def _mlp_kernel(a_ref, z0t_ref, z1t_ref, w1z0_ref, w1a_ref, w1z1_ref,
                b1_ref, w2_ref, b2_ref, o_ref, *, chunk):
    """One batch tile; batch on the lane axis.

    a_ref:      [1, TB]  int32 action ids
    z0t/z1t:    [L, TB]  latents, transposed (stored dtype: f32 or bf16)
    w1z0/w1z1:  [H, L]   W1^T slices;  w1a: [H, A] W1^T action slice
    b1: [H, 1]  w2: [H, 1]  b2: SMEM (1,) f32 scalar
    o_ref:      [1, TB]  (dtype of the latents)
    """
    A = w1a_ref.shape[1]
    TB = z0t_ref.shape[1]

    def do_chunk(off, width):
        z0c = z0t_ref[:, pl.ds(off, width)]                      # [L, width]
        z1c = z1t_ref[:, pl.ds(off, width)]                      # [L, width]
        ac = a_ref[:, pl.ds(off, width)]                         # [1, width] i32

        # Fused one-hot (never materialized in HBM): iota == action id.
        onehot = (jax.lax.broadcasted_iota(jnp.int32, (A, width), 0) == ac
                  ).astype(w1a_ref.dtype)                        # [A, width]

        # Hidden layer: W1^T @ [z0; onehot(a); z1] with batch on lanes.
        pre = (jnp.dot(w1z0_ref[...], z0c, preferred_element_type=jnp.float32)
               + jnp.dot(w1a_ref[...], onehot, preferred_element_type=jnp.float32)
               + jnp.dot(w1z1_ref[...], z1c, preferred_element_type=jnp.float32)
               + b1_ref[...].astype(jnp.float32))                # [H, width]
        h = jnp.tanh(pre)

        # 32 -> 1 projection: VPU multiply + sublane (XLU) reduction keeps the
        # result as a lane-dense [1, width] row (no N=1 MXU pass, no masked
        # column store); b2 comes from SMEM.
        logits = (jnp.sum(h * w2_ref[...].astype(jnp.float32),
                          axis=0, keepdims=True)
                  + b2_ref[0])                                   # [1, width]
        o_ref[:, pl.ds(off, width)] = jax.nn.sigmoid(logits).astype(o_ref.dtype)

    n_chunks = TB // chunk
    rem = TB - n_chunks * chunk          # static, multiple of 128

    @pl.loop(0, n_chunks)
    def _(c):
        do_chunk(pl.multiple_of(c * chunk, chunk), chunk)

    if rem:                              # static tail chunk
        do_chunk(n_chunks * chunk, rem)


def action_contrastive_forward(z0, a, z1, params, n_actions, block_batch=16384):
    """z0, z1: [B, L] (f32 or bf16); a: [B] int.  Returns fakes: [B]."""
    w1, b1, w2, b2 = params
    B, L = z0.shape
    H = w1.shape[1]
    A = int(n_actions)
    assert w1.shape[0] == 2 * L + A

    # ---- Tiling: balanced tiles; batch padded only to a multiple of 128. ----
    lanes = 128
    B128 = _round_up(max(B, 1), lanes)
    n_groups = B128 // lanes
    cap_groups = max(1, _round_up(block_batch, lanes) // lanes)
    num_tiles = pl.cdiv(n_groups, cap_groups)
    if n_groups >= 32:                     # batch large enough: give v7x's two
        num_tiles = max(num_tiles, 2)      # TensorCores at least one tile each
    gpt = pl.cdiv(n_groups, num_tiles)     # 128-lane groups per tile
    TB = gpt * lanes
    B_pad = TB * num_tiles                 # waste < num_tiles*128 rows (<~1%)
    pad = B_pad - B

    # ---- Layout plumbing: ONE fused pad+transpose pass, no dtype cast. ----
    z0t = jnp.pad(z0, ((0, pad), (0, 0))).T                  # [L, B_pad]
    z1t = jnp.pad(z1, ((0, pad), (0, 0))).T                  # [L, B_pad]
    a2d = jnp.pad(a.astype(jnp.int32), (0, pad)).reshape(1, B_pad)

    # First-layer weights pre-split into (z0 | action | z1) slices, W^T form.
    w1t_z0 = w1[:L].T                                        # [H, L]
    w1t_a = w1[L:L + A].T                                    # [H, A]
    w1t_z1 = w1[L + A:].T                                    # [H, L]
    b1c = b1.reshape(H, 1)
    w2c = w2.reshape(H, 1)
    b2s = b2.astype(jnp.float32).reshape(1)                  # SMEM scalar

    operands = (a2d, z0t, z1t, w1t_z0, w1t_a, w1t_z1, b1c, w2c, b2s)
    # Allow XLA to fold the latents' pad+transpose relayout into the call.
    fuse_ok = [op is z0t or op is z1t for op in operands]

    chunk = min(512, TB)
    kernel = functools.partial(_mlp_kernel, chunk=chunk)

    out = pl.pallas_call(
        kernel,
        out_shape=jax.ShapeDtypeStruct((1, B_pad), z0.dtype),
        grid_spec=pltpu.PrefetchScalarGridSpec(
            num_scalar_prefetch=0,
            grid=(num_tiles,),
            in_specs=[
                pl.BlockSpec((1, TB), lambda i: (0, i)),      # action ids
                pl.BlockSpec((L, TB), lambda i: (0, i)),      # z0^T tile
                pl.BlockSpec((L, TB), lambda i: (0, i)),      # z1^T tile
                pl.BlockSpec((H, L), lambda i: (0, 0)),       # W1^T z0 slice (resident)
                pl.BlockSpec((H, A), lambda i: (0, 0)),       # W1^T action slice
                pl.BlockSpec((H, L), lambda i: (0, 0)),       # W1^T z1 slice
                pl.BlockSpec((H, 1), lambda i: (0, 0)),       # b1
                pl.BlockSpec((H, 1), lambda i: (0, 0)),       # w2 column
                pl.BlockSpec(memory_space=pltpu.MemorySpace.SMEM),  # b2 scalar
            ],
            out_specs=pl.BlockSpec((1, TB), lambda i: (0, i)),
        ),
        compiler_params=pltpu.CompilerParams(
            dimension_semantics=("parallel",),
            allow_input_fusion=fuse_ok,
        ),
    )(*operands)

    # .squeeze() in the reference removes the trailing size-1 dim -> [B].
    return out[0, :B]


def init_params(key, input_size, n_hidden, n_out=1):
    """torch.nn.Linear-style init: U(-1/sqrt(fan_in), 1/sqrt(fan_in)).
    Weights stored as [in_features, out_features] (x @ W + b)."""
    k1, k2, k3, k4 = jax.random.split(key, 4)
    bound1 = 1.0 / jnp.sqrt(input_size)
    bound2 = 1.0 / jnp.sqrt(n_hidden)
    w1 = jax.random.uniform(k1, (input_size, n_hidden), jnp.float32, -bound1, bound1)
    b1 = jax.random.uniform(k2, (n_hidden,), jnp.float32, -bound1, bound1)
    w2 = jax.random.uniform(k3, (n_hidden, n_out), jnp.float32, -bound2, bound2)
    b2 = jax.random.uniform(k4, (n_out,), jnp.float32, -bound2, bound2)
    return w1, b1, w2, b2


if __name__ == "__main__":
    n_latent_dims = 4
    n_actions = 6
    n_units_per_layer = 32        # n_hidden_layers = 1 (module default)
    input_size = 2 * n_latent_dims + n_actions

    key = jax.random.PRNGKey(0)
    kp, kd1, kd2 = jax.random.split(key, 3)
    params_f32 = init_params(kp, input_size, n_units_per_layer)

    def reference(z0, a, z1, params):
        w1, b1, w2, b2 = [p.astype(jnp.float32) for p in params]
        ctx = jnp.concatenate(
            [z0.astype(jnp.float32),
             jax.nn.one_hot(a, n_actions, dtype=jnp.float32),
             z1.astype(jnp.float32)], axis=-1)
        return jax.nn.sigmoid(jnp.tanh(ctx @ w1 + b1) @ w2 + b2).squeeze(-1)

    # --- Check 1: small f32 batch (module-default shapes). ---
    batch = 8
    k1, k2, k3 = jax.random.split(kd1, 3)
    z0 = jax.random.normal(k1, (batch, n_latent_dims), jnp.float32)
    z1 = jax.random.normal(k2, (batch, n_latent_dims), jnp.float32)
    a = jax.random.randint(k3, (batch,), 0, n_actions, jnp.int32)
    fakes = jax.block_until_ready(
        action_contrastive_forward(z0, a, z1, params_f32, n_actions))
    ref = reference(z0, a, z1, params_f32)
    assert fakes.shape == (batch,)
    assert jnp.allclose(fakes, ref, atol=5e-5, rtol=5e-5)

    # --- Check 2: bf16 latents + weights, unaligned batch, multi-tile grid,
    #     tail-chunk path (batch 4200 -> pad to 4224, 3 tiles of 1408 lanes). ---
    batch2 = 4200
    k1, k2, k3 = jax.random.split(kd2, 3)
    z0b = jax.random.normal(k1, (batch2, n_latent_dims)).astype(jnp.bfloat16)
    z1b = jax.random.normal(k2, (batch2, n_latent_dims)).astype(jnp.bfloat16)
    ab = jax.random.randint(k3, (batch2,), 0, n_actions, jnp.int32)
    params_bf16 = tuple(p.astype(jnp.bfloat16) for p in params_f32)
    fakes_b = jax.block_until_ready(
        action_contrastive_forward(z0b, ab, z1b, params_bf16, n_actions,
                                   block_batch=2048))
    ref_b = reference(z0b, ab, z1b, params_bf16)
    assert fakes_b.shape == (batch2,)
    assert jnp.allclose(fakes_b.astype(jnp.float32), ref_b, atol=3e-2)

    print("KERNEL_OK")
</pallas_src>

<mosaic_0001>
module attributes {stable_mosaic.version = 11 : i64} {
  func.func @_mlp_kernel(%arg0: i32, %arg1: memref<1x128xi32, #tpu.memory_space<vmem>>, %arg2: memref<4x128xf32, #tpu.memory_space<vmem>>, %arg3: memref<4x128xf32, #tpu.memory_space<vmem>>, %arg4: memref<32x4xf32, #tpu.memory_space<vmem>>, %arg5: memref<32x6xf32, #tpu.memory_space<vmem>>, %arg6: memref<32x4xf32, #tpu.memory_space<vmem>>, %arg7: memref<32x1xf32, #tpu.memory_space<vmem>>, %arg8: memref<32x1xf32, #tpu.memory_space<vmem>>, %arg9: memref<1xf32, #tpu.memory_space<smem>>, %arg10: memref<1x128xf32, #tpu.memory_space<vmem>>) attributes {dimension_semantics = [#tpu.dimension_semantics<parallel>], iteration_bounds = array<i64: 1>, scalar_prefetch = 0 : i64, scratch_operands = 0 : i64, tpu.core_type = #tpu.core_type<tc>, window_params = [{transform_indices = @transform_0, window_bounds = array<i64: 1, 128>}, {transform_indices = @transform_1, window_bounds = array<i64: 4, 128>}, {transform_indices = @transform_2, window_bounds = array<i64: 4, 128>}, {pipeline_mode = #tpu.pipeline_mode<synchronous>, transform_indices = @transform_3, window_bounds = array<i64: 32, 4>}, {pipeline_mode = #tpu.pipeline_mode<synchronous>, transform_indices = @transform_4, window_bounds = array<i64: 32, 6>}, {pipeline_mode = #tpu.pipeline_mode<synchronous>, transform_indices = @transform_5, window_bounds = array<i64: 32, 4>}, {pipeline_mode = #tpu.pipeline_mode<synchronous>, transform_indices = @transform_6, window_bounds = array<i64: 32, 1>}, {pipeline_mode = #tpu.pipeline_mode<synchronous>, transform_indices = @transform_7, window_bounds = array<i64: 32, 1>}, {transform_indices = @transform_8, window_bounds = array<i64: 1>}, {transform_indices = @transform_9, window_bounds = array<i64: 1, 128>}]} {
    %c0_i32 = arith.constant 0 : i32
    %c1_i32 = arith.constant 1 : i32
    %0 = arith.muli %c0_i32, %c1_i32 : i32
    %c0_i32_0 = arith.constant 0 : i32
    %1 = arith.addi %c0_i32_0, %0 : i32
    %c128_i32 = arith.constant 128 : i32
    %2 = arith.muli %1, %c128_i32 : i32
    %3 = tpu.assume_multiple %2, 128 : i32
    %c0 = arith.constant 0 : index
    %4 = arith.index_cast %3 : i32 to index
    %5 = vector.load %arg2[%c0, %4] : memref<4x128xf32, #tpu.memory_space<vmem>>, vector<4x128xf32>
    %c0_1 = arith.constant 0 : index
    %6 = arith.index_cast %3 : i32 to index
    %7 = vector.load %arg3[%c0_1, %6] : memref<4x128xf32, #tpu.memory_space<vmem>>, vector<4x128xf32>
    %c0_2 = arith.constant 0 : index
    %8 = arith.index_cast %3 : i32 to index
    %9 = vector.load %arg1[%c0_2, %8] : memref<1x128xi32, #tpu.memory_space<vmem>>, vector<1x128xi32>
    %10 = tpu.iota {dimensions = array<i32: 0>} : vector<6x128xi32>
    %11 = vector.broadcast %9 : vector<1x128xi32> to vector<6x128xi32>
    %12 = arith.cmpi eq, %10, %11 : vector<6x128xi32>
    %13 = arith.extui %12 : vector<6x128xi1> to vector<6x128xi32>
    %14 = arith.sitofp %13 : vector<6x128xi32> to vector<6x128xf32>
    %c0_3 = arith.constant 0 : index
    %c0_4 = arith.constant 0 : index
    %15 = vector.load %arg4[%c0_3, %c0_4] : memref<32x4xf32, #tpu.memory_space<vmem>>, vector<32x4xf32>
    %cst = arith.constant dense<0.000000e+00> : vector<32x128xf32>
    %16 = tpu.matmul %15, %5, %cst {dimension_numbers = #tpu.dot_dimension_numbers<[1], [0], [0], [1], [0, 0, 1, 1], [], []>} : vector<32x4xf32>, vector<4x128xf32>, vector<32x128xf32> -> vector<32x128xf32>
    %c0_5 = arith.constant 0 : index
    %c0_6 = arith.constant 0 : index
    %17 = vector.load %arg5[%c0_5, %c0_6] : memref<32x6xf32, #tpu.memory_space<vmem>>, vector<32x6xf32>
    %cst_7 = arith.constant dense<0.000000e+00> : vector<32x128xf32>
    %18 = tpu.matmul %17, %14, %cst_7 {dimension_numbers = #tpu.dot_dimension_numbers<[1], [0], [0], [1], [0, 0, 1, 1], [], []>} : vector<32x6xf32>, vector<6x128xf32>, vector<32x128xf32> -> vector<32x128xf32>
    %19 = arith.addf %16, %18 : vector<32x128xf32>
    %c0_8 = arith.constant 0 : index
    %c0_9 = arith.constant 0 : index
    %20 = vector.load %arg6[%c0_8, %c0_9] : memref<32x4xf32, #tpu.memory_space<vmem>>, vector<32x4xf32>
    %cst_10 = arith.constant dense<0.000000e+00> : vector<32x128xf32>
    %21 = tpu.matmul %20, %7, %cst_10 {dimension_numbers = #tpu.dot_dimension_numbers<[1], [0], [0], [1], [0, 0, 1, 1], [], []>} : vector<32x4xf32>, vector<4x128xf32>, vector<32x128xf32> -> vector<32x128xf32>
    %22 = arith.addf %19, %21 : vector<32x128xf32>
    %c0_11 = arith.constant 0 : index
    %c0_12 = arith.constant 0 : index
    %23 = vector.load %arg7[%c0_11, %c0_12] : memref<32x1xf32, #tpu.memory_space<vmem>>, vector<32x1xf32>
    %24 = vector.broadcast %23 : vector<32x1xf32> to vector<32x128xf32>
    %25 = arith.addf %22, %24 : vector<32x128xf32>
    %26 = math.tanh %25 : vector<32x128xf32>
    %c0_13 = arith.constant 0 : index
    %c0_14 = arith.constant 0 : index
    %27 = vector.load %arg8[%c0_13, %c0_14] : memref<32x1xf32, #tpu.memory_space<vmem>>, vector<32x1xf32>
    %28 = vector.broadcast %27 : vector<32x1xf32> to vector<32x128xf32>
    %29 = arith.mulf %26, %28 : vector<32x128xf32>
    %cst_15 = arith.constant dense<0.000000e+00> : vector<128xf32>
    %30 = vector.multi_reduction <add>, %29, %cst_15 [0] : vector<32x128xf32> to vector<128xf32>
    %31 = vector.shape_cast %30 : vector<128xf32> to vector<1x128xf32>
    %c0_16 = arith.constant 0 : index
    %32 = memref.load %arg9[%c0_16] : memref<1xf32, #tpu.memory_space<smem>>
    %33 = vector.broadcast %32 : f32 to vector<1x128xf32>
    %34 = arith.addf %31, %33 : vector<1x128xf32>
    %35 = arith.negf %34 : vector<1x128xf32>
    %36 = math.exp %35 : vector<1x128xf32>
    %cst_17 = arith.constant 1.000000e+00 : f32
    %37 = vector.broadcast %cst_17 : f32 to vector<1x128xf32>
    %38 = arith.addf %37, %36 : vector<1x128xf32>
    %39 = arith.divf %37, %38 : vector<1x128xf32>
    %c0_18 = arith.constant 0 : index
    %40 = arith.index_cast %3 : i32 to index
    %41 = vector.load %arg10[%c0_18, %40] : memref<1x128xf32, #tpu.memory_space<vmem>>, vector<1x128xf32>
    tpu.vector_store %arg10[%c0_18, %40], %39 {strides = array<i32>} : memref<1x128xf32, #tpu.memory_space<vmem>>, vector<1x128xf32>,
    %c1_i32_19 = arith.constant 1 : i32
    return
  }
  func.func @transform_0(%arg0: i32) -> (i32, i32) {
    %c0_i32 = arith.constant 0 : i32
    %c0_i32_0 = arith.constant 0 : i32
    return %c0_i32, %arg0 : i32, i32
  }
  func.func @transform_1(%arg0: i32) -> (i32, i32) {
    %c0_i32 = arith.constant 0 : i32
    %c0_i32_0 = arith.constant 0 : i32
    return %c0_i32, %arg0 : i32, i32
  }
  func.func @transform_2(%arg0: i32) -> (i32, i32) {
    %c0_i32 = arith.constant 0 : i32
    %c0_i32_0 = arith.constant 0 : i32
    return %c0_i32, %arg0 : i32, i32
  }
  func.func @transform_3(%arg0: i32) -> (i32, i32) {
    %c0_i32 = arith.constant 0 : i32
    %c0_i32_0 = arith.constant 0 : i32
    %c0_i32_1 = arith.constant 0 : i32
    return %c0_i32, %c0_i32_0 : i32, i32
  }
  func.func @transform_4(%arg0: i32) -> (i32, i32) {
    %c0_i32 = arith.constant 0 : i32
    %c0_i32_0 = arith.constant 0 : i32
    %c0_i32_1 = arith.constant 0 : i32
    return %c0_i32, %c0_i32_0 : i32, i32
  }
  func.func @transform_5(%arg0: i32) -> (i32, i32) {
    %c0_i32 = arith.constant 0 : i32
    %c0_i32_0 = arith.constant 0 : i32
    %c0_i32_1 = arith.constant 0 : i32
    return %c0_i32, %c0_i32_0 : i32, i32
  }
  func.func @transform_6(%arg0: i32) -> (i32, i32) {
    %c0_i32 = arith.constant 0 : i32
    %c0_i32_0 = arith.constant 0 : i32
    %c0_i32_1 = arith.constant 0 : i32
    return %c0_i32, %c0_i32_0 : i32, i32
  }
  func.func @transform_7(%arg0: i32) -> (i32, i32) {
    %c0_i32 = arith.constant 0 : i32
    %c0_i32_0 = arith.constant 0 : i32
    %c0_i32_1 = arith.constant 0 : i32
    return %c0_i32, %c0_i32_0 : i32, i32
  }
  func.func @transform_8(%arg0: i32) -> i32 {
    %c0_i32 = arith.constant 0 : i32
    %c0_i32_0 = arith.constant 0 : i32
    return %c0_i32 : i32
  }
  func.func @transform_9(%arg0: i32) -> (i32, i32) {
    %c0_i32 = arith.constant 0 : i32
    %c0_i32_0 = arith.constant 0 : i32
    return %c0_i32, %arg0 : i32, i32
  }
}

</mosaic_0001>

<bundles_post_ra>
// kernel: tpu_custom_call.1
= control target key start
LH: loop header
LB: loop body
LE: loop exit
PB: predicated region body
PF: predicated region fallthrough
CT: control target
= control target key end

     0   :  { %vm169_vm0 = vcmask 1043456   ;;  %vm156_vm1 = vcmask 31744   ;;  %v37_v3 = vlaneseq  ;;  %vm54_vm2 = vcmask 48128   ;;  %s724_s0 = inlined_call_operand.vmem [shape: s32[1,128], index: 0, kind: input, shape index: {}]   ;;  %s725_s1 = inlined_call_operand.vmem [shape: f32[4,128], index: 1, kind: input, shape index: {}]   ;;  %s726_s2 = inlined_call_operand.vmem [shape: f32[4,128], index: 2, kind: input, shape index: {}]   ;;  %s727_s3 = inlined_call_operand.vmem [shape: f32[32,4], index: 3, kind: input, shape index: {}]   ;;  %s728_s4 = inlined_call_operand.vmem [shape: f32[32,6], index: 4, kind: input, shape index: {}]   ;;  %s729_s5 = inlined_call_operand.vmem [shape: f32[32,4], index: 5, kind: input, shape index: {}]   ;;  %s730_s6 = inlined_call_operand.vmem [shape: f32[32,1], index: 6, kind: input, shape index: {}]   ;;  %s731_s7 = inlined_call_operand.vmem [shape: f32[32,1], index: 7, kind: input, shape index: {}]   ;;  %s732_s8 = inlined_call_operand.<no memory space> [shape: f32[1], index: 8, kind: input, shape index: {}]   ;;  %s733_s9 = inlined_call_operand.hbm [shape: f32[1,128], index: 9, kind: output, shape index: {}]  }
   0x1   :  { %v34_v0 = vld [vmem:[%s725_s1] sm:$0xf]  ;;  %v47_v2 = vld [vmem:[%s727_s3 + $0x8] sm:$0xff]  ;;  %vm67_vm3 = vcmask 1045504   ;;  %v567_v9 = vmov 0.0   ;;  %v568_v12 = vmov 0  }
   0x2   :  { %v46_v1 = vld [vmem:[%s727_s3] sm:$0xff]  ;;  %500 = vmatprep.subr.msk.mxu0 %vm169_vm0, %v34_v0  ;;  %v38_v6 = vshrl.u32 %v37_v3, 7  ;;  %v51_v11 = vld [vmem:[%s728_s4 + $0x8] sm:$0xff]  ;;  %529 = vset.pattern.permute.xlu0 %v568_v12  ;;  %v368_v14 = vld [vmem:[%s730_s6 + $0x10] sm:$0xff] }
   0x3   :  { %502 = vmatprep.mubr.msk.f32.mxu0 %vm156_vm1, %v46_v1  ;;  %v459_v4 = vld [vmem:[%s724_s0] ss:$0 sm:$0xff]  ;;  %501 = vmatpush3.msk.msra.mxu0 %vm169_vm0, %v34_v0  ;;  %v52_v15 = vld [vmem:[%s728_s4 + $0x10] sm:$0xff]  ;;  %v367_v16 = vld [vmem:[%s730_s6 + $0x8] sm:$0xff] }
   0x4   :  { %v50_v5 = vld [vmem:[%s728_s4] sm:$0xff]  ;;  %503 = vmatmul.mubr.msk.f32.vlgmr.msra.gmra.mrb[0].mxu0 %vm156_vm1, %v47_v2  ;;  %vm43_vm4 = vcmp.eq.s32.totalorder %v38_v6, %v459_v4  ;;  %530 = vset.pattern.permute.xlu1 %v568_v12  ;;  %v259_v17 = vld [vmem:[%s729_s5 + $0x8] sm:$0xff]  ;;  %v369_v18 = vld [vmem:[%s730_s6 + $0x18] sm:$0xff] }
   0x5   :  { %494 = vmatprep.mubr.msk.f32.mxu1 %vm54_vm2, %v50_v5  ;;  %v35_v7 = vld [vmem:[%s726_s2] sm:$0xf]  ;;  %v460_v10 = vsel %vm43_vm4, 1.0, %v567_v9  ;;  %382 = vperm.xlu1 %530, %v368_v14  }
   0x6   :  { %v258_v8 = vld [vmem:[%s729_s5] sm:$0xff]  ;;  %508 = vmatprep.subr.msk.mxu0 %vm169_vm0, %v35_v7  ;;  %492 = vmatprep.subr.msk.mxu1 %vm67_vm3, %v460_v10 }
   0x7   :  { %509 = vmatpush3.msk.msra.mxu0 %vm169_vm0, %v35_v7  ;;  %510 = vmatprep.mubr.msk.f32.mxu0 %vm156_vm1, %v258_v8  ;;  %v366_v13 = vld [vmem:[%s730_s6] sm:$0xff] }
   0x8   :  { %372 = vperm.xlu0 %529, %v366_v13   ;;  %493 = vmatpush3.msk.msra.mxu1 %vm67_vm3, %v460_v10 }
   0x9   :  { %495 = vmatmul.mubr.msk.f32.vlgmr.msra.gmra.mrb[0].mxu1 %vm54_vm2, %v51_v11  ;;  %516 = vmatprep.subr.msk.mxu1 %vm169_vm0, %v34_v0 }
   0xa   :  { %15 = vsyncpa [#allocation4], 0  ;;  %517 = vmatpush3.msk.msra.mxu1 %vm169_vm0, %v34_v0  ;;  %497 = vmatprep.mubr.msk.f32.mxu1 %vm54_vm2, %v52_v15  ;;  %v53_v19 = vld [vmem:[%s728_s4 + $0x18] sm:$0xff]  ;;  %v260_v20 = vld [vmem:[%s729_s5 + $0x10] sm:$0xff]  ;;  %v436_v4 = vstv %s732_s8  ;;  %s569_s25 = smov [#allocation3]  }
   0xb   :  { %v48_v21 = vld [vmem:[%s727_s3 + $0x10] sm:$0xff]  ;;  %387 = vperm.xlu1 %530, %v369_v18   ;;  %v398_v22 = vld [vmem:[%s731_s7] sm:$0xff]  ;;  %v261_v23 = vld [vmem:[%s729_s5 + $0x18] sm:$0xff]  ;;  %s451_s26 = sshll.u32 %s569_s25, 4  ;;  %s452_s26 = int_to_ptr.vmem [resolvable:$true] %s451_s26 }
   0xc   :  { %377 = vperm.xlu0 %529, %v367_v16   ;;  %511 = vmatmul.mubr.msk.f32.vlgmr.msra.gmra.mrb[0].mxu0 %vm156_vm1, %v259_v17  ;;  %v399_v24 = vld [vmem:[%s731_s7 + $0x8] sm:$0xff]  ;;  %v400_v25 = vld [vmem:[%s731_s7 + $0x10] sm:$0xff]  ;;  %v401_v26 = vld [vmem:[%s731_s7 + $0x18] sm:$0xff]  ;;  %s543_s27 = scalar_lea.vmem %s452_s26, 16  ;;  %s547_s28 = scalar_lea.vmem %s452_s26, 32 }
   0xd   :  { %498 = vmatmul.mubr.msk.f32.gmra.mrb[2].mxu1 %vm54_vm2, %v53_v19  ;;  %513 = vmatprep.mubr.msk.f32.mxu0 %vm156_vm1, %v260_v20  ;;  %v49_v27 = vld [vmem:[%s727_s3 + $0x18] sm:$0xff]  ;;  %p544_p0 = scmp.ne.s32.totalorder %s452_s26, %s543_s27  ;;  %p548_p1 = scmp.lt.s32.totalorder %s452_s26, %s452_s26 }
   0xe   :  { %505 = vmatprep.mubr.msk.f32.mxu1 %vm156_vm1, %v48_v21  ;;  %p549_p2 = scmp.lt.s32.totalorder %s547_s28, %s543_s27 }
   0xf   :  { %409 = vperm.xlu1 %530, %v399_v24  }
  0x10   :  { %404 = vperm.xlu0 %529, %v398_v22   ;;  %514 = vmatmul.mubr.msk.f32.gmra.mrb[2].mxu0 %vm156_vm1, %v261_v23  ;;  %p550_p3 = por %p549_p2, %p548_p1 }
  0x12   :  { %p551_p4 = pnand %p550_p3, %p544_p0 }
  0x13   :  { %419 = vperm.xlu1 %530, %v401_v26  }
  0x14   :  { %414 = vperm.xlu0 %529, %v400_v25  }
  0x15   :  { %506 = vmatmul.mubr.msk.f32.vlgmr.msra.gmra.mrb[2].mxu1 %vm156_vm1, %v49_v27 }
  0x84   :  { %v383_v36 = vpop.permute.xlu1 %382 }
  0x87   :  { %v373_v28 = vpop.permute.xlu0 %372 }
  0x8a   :  { %v388_v41 = vpop.permute.xlu1 %387 }
  0x8b   :  { %v378_v34 = vpop.permute.xlu0 %377 }
  0x8e   :  { %v410_v49 = vpop.permute.xlu1 %409 }
  0x8f   :  { %v405_v51 = vpop.permute.xlu0 %404 }
  0x92   :  { %v420_v59 = vpop.permute.xlu1 %419 }
  0x93   :  { %v415_v57 = vpop.permute.xlu0 %414 }
  0xdc   :  { %v496_v29 = vpop.f32.mrb[0].mxu1 }
  0xdd   :  { %v137_v30 = vpop.f32.mrb[1].mxu1 }
  0xdf   :  { %v512_v31 = vpop.f32.mrb[0].mxu0 }
  0xe0   :  { %v518_v32 = vadd.f32 %v512_v31, %v496_v29  ;;  %v343_v33 = vpop.f32.mrb[1].mxu0 }
  0xe1   :  { %v519_v35 = vadd.f32 %v343_v33, %v137_v30 }
  0xe2   :  { %v391_v37 = vadd.f32 %v518_v32, %v378_v34 }
  0xe3   :  { %v390_v38 = vadd.f32 %v519_v35, %v373_v28  ;;  %v515_v39 = vpop.f32.mrb[2].mxu0 }
  0xe4   :  { %531 = vtanh.f32 %v391_v37  ;;  %v353_v40 = vpop.f32.mrb[3].mxu0 }
  0xe5   :  { %533 = vtanh.f32 %v390_v38 }
  0xe8   :  { %v507_v42 = vpop.f32.mrb[2].mxu1 }
  0xe9   :  { %v520_v43 = vadd.f32 %v515_v39, %v507_v42  ;;  %v249_v44 = vpop.f32.mrb[3].mxu1 }
  0xea   :  { %v521_v45 = vadd.f32 %v353_v40, %v249_v44 }
  0xeb   :  { %v393_v46 = vadd.f32 %v520_v43, %v388_v41 }
  0xec   :  { %v392_v47 = vadd.f32 %v521_v45, %v383_v36 }
  0xed   :  { %535 = vtanh.f32 %v393_v46 }
  0xee   :  { %v532_v48 = vpop.eup %531  ;;  %537 = vtanh.f32 %v392_v47 }
  0xef   :  { %v534_v50 = vpop.eup %533  ;;  %v423_v52 = vmul.f32 %v532_v48, %v410_v49 }
  0xf0   :  { %v422_v53 = vmul.f32 %v534_v50, %v405_v51 }
  0xf2   :  { %v426_v54 = vadd.f32 %v423_v52, %v422_v53 }
  0xf7   :  { %v536_v55 = vpop.eup %535 }
  0xf8   :  { %v538_v56 = vpop.eup %537  ;;  %v425_v60 = vmul.f32 %v536_v55, %v420_v59 }
  0xf9   :  { %v424_v58 = vmul.f32 %v538_v56, %v415_v57 }
  0xfb   :  { %v427_v61 = vadd.f32 %v426_v54, %v424_v58 }
  0xfd   :  { %v428_v62 = vadd.f32 %v427_v61, %v425_v60 }
  0xff   :  { %v429_v63 = vrot.slane %v428_v62, 4 }
 0x101   :  { %v430_v0 = vadd.f32 %v429_v63, %v428_v62 }
 0x103   :  { %v431_v1 = vrot.slane %v430_v0, 2 }
 0x105   :  { %v432_v2 = vadd.f32 %v431_v1, %v430_v0 }
 0x107   :  { %v433_v3 = vrot.slane %v432_v2, 1 }
 0x109   :  { %v434_v5 = vadd.f32 %v433_v3, %v432_v2 }
 0x10b   :  { %v437_v6 = vadd.f32 %v436_v4, %v434_v5 }
 0x10d   :  { %v476_v7 = vmul.f32 -1.442695, %v437_v6 }
 0x10f   :  { %539 = vpow2.f32 %v476_v7 }
 0x119   :  { %v540_v8 = vpop.eup %539 }
 0x11a   :  { %v441_v9 = vadd.f32 1.0, %v540_v8 }
 0x11c   :  { %541 = vrcp.f32 %v441_v9 }
 0x126   :  { %v542_v10 = vpop.eup %541 }
 0x127   :  { %444 = vst [vmem:[#allocation3] sm:$0x1] %v542_v10 }
 0x128   :  { %554 = shalt.err (!%p551_p4)
}
 0x129   :  { %s555_s30 = scalar_lea.hbm %s733_s9, 16 }
 0x12a   :  { %p556_p5 = scmp.ne.s32.totalorder %s733_s9, %s555_s30  ;;  %p559_p6 = scmp.lt.u32.totalorder %s555_s30, %s733_s9 }
 0x12c   :  { %p561_p7 = pnand %p559_p6, %p556_p5 }
 0x12e   :  { %564 = shalt.err (!%p561_p7)
}
 0x12f   :  { %454 = dma.vmem_to_hbm [thread:$0]  %s452_s26, 16, %s733_s9, [#allocation4]  }
 0x130   :  { %565 = dma.done.wait [#allocation4], 16  }
 0x131   :  { %566 = vsyncadd [#allocation4], 4294967280 }
 0x132   :  { %458 = vsyncpa [#allocation4], 1 }

</bundles_post_ra>
